<compile_context>
chip_gen: v6e
topology: v6e:2x2x1
jax: 0.10.0
libtpu: 0.0.40
codegen_flags: <defaults>
</compile_context>

<pallas_src>
import numpy as np
import jax
import jax.numpy as jnp
from jax.experimental import pallas as pl
from jax.experimental.pallas import tpu as pltpu

D_MODEL = 32   # d_model = h * d_k (required by the `q_sig * out` gating)
H = 4
D_K = 8
D_V = 8        # the module's .view uses d_k, so d_v must equal d_k
GRID = 8       # grid_count == nq == nk
B = 2
EPS = 1e-5     # nn.LayerNorm default


def _make_kernel(b_s, nq, nk, d_model, lane_pack, eps):
    rq = b_s * nq
    rk = b_s * nk
    mask_off = 0                      # rows [0, d)        : block-diagonal head mask
    scale_off = d_model               # rows [d, d+nq*nk)  : scale expanded to lane width
    bias_off = d_model + nq * nk      # rows [.., ..+6)    : bq, bk, bv, bo, gamma, beta

    def kernel(x_ref, w_ref, p_ref, out_ref):
        x = x_ref[...]                # (rq + 2*rk, d)  stacked [Q; K; V] rows
        w = w_ref[...]                # (d, 4d)         [wq | wk | wv | wo]
        p = p_ref[...]                # (d + nq*nk + 6, d)

        head_mask = p[mask_off:mask_off + d_model, :]                      # (d, d)
        scale_exp = p[scale_off:scale_off + nq * nk, :].reshape(nq, nk, d_model)
        b_q   = p[bias_off + 0:bias_off + 1, :]
        b_k   = p[bias_off + 1:bias_off + 2, :]
        b_v   = p[bias_off + 2:bias_off + 3, :]
        b_o   = p[bias_off + 3:bias_off + 4, :]
        gamma = p[bias_off + 4:bias_off + 5, :]
        beta  = p[bias_off + 5:bias_off + 6, :]

        q_in = x[0:rq, :]             # raw queries (residual)

        # ---- fused Q/K/V projection: ONE MXU push against the whole weight slab
        #      (unused cross-blocks ride along for free on the wide MXU).
        proj = jnp.dot(x, w, preferred_element_type=jnp.float32)   # (rq+2rk, 4d)
        q_sig  = proj[0:rq, 0:d_model] + b_q
        k_proj = proj[rq:rq + rk, d_model:2 * d_model] + b_k
        v_proj = proj[rq + rk:rq + 2 * rk, 2 * d_model:3 * d_model] + b_v

        q3 = q_sig.reshape(b_s, nq, d_model)
        k3 = k_proj.reshape(b_s, nk, d_model)
        v3 = v_proj.reshape(b_s, nk, d_model)

        # ---- all heads at once at lane width d_model (no per-head unroll).
        att = q3[:, :, None, :] * k3[:, None, :, :]        # (b_s, nq, nk, d)

        # Per-head d_k sum, broadcast straight back to lane width d in ONE matmul
        # against the block-diagonal 0/1 mask (mask[i,j] = 1 iff head(i) == head(j)).
        logits = jnp.dot(att.reshape(rq * nk, d_model), head_mask,
                         preferred_element_type=jnp.float32)
        logits = logits.reshape(b_s, nq, nk, d_model) * scale_exp[None]

        # Softmax over keys (sublane axis).  Columns within a head are identical,
        # so this directly yields the head-expanded probabilities p_exp.
        m = jnp.max(logits, axis=2, keepdims=True)
        e = jnp.exp(logits - m)
        s = jnp.sum(e, axis=2, keepdims=True)
        p_exp = e / s                                       # (b_s, nq, nk, d)

        # v = sigmoid(att) * fc_v(values); probability-weighted sum over keys.
        vmod = jax.nn.sigmoid(att) * v3[:, None, :, :]      # (b_s, nq, nk, d)
        image = jnp.sum(p_exp * vmod, axis=2)               # (b_s, nq, d)

        # Output projection (wo = last d columns of the slab) + gating.
        out = jnp.dot(image.reshape(rq, d_model), w[:, 3 * d_model:4 * d_model],
                      preferred_element_type=jnp.float32) + b_o
        out = jax.nn.sigmoid(q_sig * out) * out

        # dropout = identity (eval); residual + LayerNorm (rsqrt on the EUP).
        y = q_in + out
        mu = jnp.mean(y, axis=-1, keepdims=True)
        var = jnp.mean((y - mu) ** 2, axis=-1, keepdims=True)
        y = (y - mu) * jax.lax.rsqrt(var + eps)
        y = y * gamma + beta                                # (rq, d)

        if lane_pack:
            # Lane-dense writeback: pack 128//d rows per output row so the final
            # stores are unmasked full-width vst (wrapper untangles the slab).
            rows_per = 128 // d_model
            rows_blk = rq // rows_per
            out_ref[...] = jnp.concatenate(
                [y[i * rows_blk:(i + 1) * rows_blk, :] for i in range(rows_per)],
                axis=1)
        else:
            out_ref[...] = y

    return kernel


def prepare_params(params, nq, nk):
    """One-time parameter packing (hoisted out of the per-call hot path)."""
    wq, bq, wk, bk, wv, bv, wo, bo, scale, gamma, beta = params
    d_model = wq.shape[0]
    h = scale.shape[1]
    d_k = wq.shape[1] // h

    # [wq | wk | wv | wo] -> one lane-dense (d, 4d) weight slab (single DMA).
    w_slab = jnp.concatenate([wq, wk, wv, wo], axis=1).astype(jnp.float32)

    # 0/1 block-diagonal head mask, shipped as data (no in-kernel iota build).
    ids = np.arange(d_model) // d_k
    head_mask = jnp.asarray((ids[:, None] == ids[None, :]).astype(np.float32))

    # scale expanded to lane width: scale_exp[q, k, d] = scale[0, d // d_k, q, k].
    scale_exp = jnp.repeat(jnp.transpose(scale[0], (1, 2, 0)), d_k, axis=-1)

    param_slab = jnp.concatenate(
        [head_mask,                                   # rows [0, d)
         scale_exp.reshape(nq * nk, d_model),         # rows [d, d + nq*nk)
         bq, bk, bv, bo, gamma, beta],                # 6 bias/LN rows
        axis=0).astype(jnp.float32)
    return w_slab, param_slab


def mha_encoder(queries, keys, values, w_slab, param_slab):
    b_s, nq, d_model = queries.shape
    nk = keys.shape[1]
    rq = b_s * nq

    # Stack Q/K/V rows wrapper-side: one input DMA, no in-kernel concat copy.
    x = jnp.concatenate([queries.reshape(-1, d_model),
                         keys.reshape(-1, d_model),
                         values.reshape(-1, d_model)], axis=0)

    lane_pack = (d_model <= 128 and 128 % d_model == 0
                 and rq % (128 // d_model) == 0)
    if lane_pack:
        rows_per = 128 // d_model
        rows_blk = rq // rows_per
        out_shape = jax.ShapeDtypeStruct((rows_blk, rows_per * d_model), jnp.float32)
    else:
        out_shape = jax.ShapeDtypeStruct((rq, d_model), jnp.float32)

    vmem = pl.BlockSpec(memory_space=pltpu.MemorySpace.VMEM)
    kernel = _make_kernel(b_s, nq, nk, d_model, lane_pack, EPS)
    out = pl.pallas_call(
        kernel,
        out_shape=out_shape,
        in_specs=[vmem, vmem, vmem],
        out_specs=vmem,
    )(x, w_slab, param_slab)

    if lane_pack:
        out = out.reshape(rows_blk, rows_per, d_model).transpose(1, 0, 2)
    return out.reshape(b_s, nq, d_model)


def reference(queries, keys, values, params):
    """Pure-JAX re-implementation of the PyTorch forward (eval mode)."""
    wq, bq, wk, bk, wv, bv, wo, bo, scale, gamma, beta = params
    b_s, nq, _ = queries.shape
    nk = keys.shape[1]
    h = scale.shape[1]
    d_k = wq.shape[1] // h
    q_sig = queries @ wq + bq[0]
    q = q_sig[:, :, None, :]
    k = (keys @ wk + bk[0])[:, None, :, :]
    att = q * k                                            # (b, nq, nk, h*d_k)
    sig = jax.nn.sigmoid(att)
    v_proj = (values @ wv + bv[0])[:, None, :, :]
    v = (sig * v_proj).reshape(b_s, nq, nk, h, d_k).transpose(0, 3, 1, 2, 4)
    att5 = att.reshape(b_s, nq, nk, h, d_k).transpose(0, 3, 1, 2, 4)
    logits = att5.sum(-1) * scale                          # (b, h, nq, nk)
    p = jax.nn.softmax(logits, axis=-1)
    image = jnp.einsum('bhqk,bhqkd->bhqd', p, v)
    image = image.transpose(0, 2, 1, 3).reshape(b_s, nq, h * d_k)
    out = image @ wo + bo[0]
    out = jax.nn.sigmoid(q_sig * out) * out
    y = queries + out
    mean = y.mean(-1, keepdims=True)
    var = ((y - mean) ** 2).mean(-1, keepdims=True)
    return (y - mean) / jnp.sqrt(var + EPS) * gamma[0] + beta[0]


if __name__ == "__main__":
    key = jax.random.PRNGKey(0)
    ks = jax.random.split(key, 11)

    wq = 0.1 * jax.random.normal(ks[0], (D_MODEL, H * D_K), jnp.float32)
    bq = 0.1 * jax.random.normal(ks[1], (1, H * D_K), jnp.float32)
    wk = 0.1 * jax.random.normal(ks[2], (D_MODEL, H * D_K), jnp.float32)
    bk = 0.1 * jax.random.normal(ks[3], (1, H * D_K), jnp.float32)
    wv = 0.1 * jax.random.normal(ks[4], (D_MODEL, H * D_V), jnp.float32)
    bv = 0.1 * jax.random.normal(ks[5], (1, H * D_V), jnp.float32)
    wo = 0.1 * jax.random.normal(ks[6], (H * D_V, D_MODEL), jnp.float32)
    bo = 0.1 * jax.random.normal(ks[7], (1, D_MODEL), jnp.float32)
    scale = jnp.ones((1, H, GRID, GRID), jnp.float32) / jnp.sqrt(jnp.float32(D_K))
    gamma = jnp.ones((1, D_MODEL), jnp.float32)   # nn.LayerNorm default weight
    beta = jnp.zeros((1, D_MODEL), jnp.float32)   # nn.LayerNorm default bias
    params = (wq, bq, wk, bk, wv, bv, wo, bo, scale, gamma, beta)

    # One-time parameter packing (outside the hot path).
    w_slab, param_slab = prepare_params(params, GRID, GRID)

    queries = jax.random.normal(ks[8], (B, GRID, D_MODEL), jnp.float32)
    keys_in = jax.random.normal(ks[9], (B, GRID, D_MODEL), jnp.float32)
    values_in = jax.random.normal(ks[10], (B, GRID, D_MODEL), jnp.float32)

    mha = jax.jit(mha_encoder)
    out = jax.block_until_ready(mha(queries, keys_in, values_in, w_slab, param_slab))
    ref = jax.block_until_ready(reference(queries, keys_in, values_in, params))

    assert out.shape == (B, GRID, D_MODEL)
    assert jnp.allclose(out, ref, atol=1e-4, rtol=1e-4), (
        f"max abs err {jnp.max(jnp.abs(out - ref))}")
    print("KERNEL_OK")
</pallas_src>

<mosaic_0001>
module attributes {stable_mosaic.version = 11 : i64} {
  func.func @kernel(%arg0: memref<48x32xf32, #tpu.memory_space<vmem>>, %arg1: memref<32x128xf32, #tpu.memory_space<vmem>>, %arg2: memref<102x32xf32, #tpu.memory_space<vmem>>, %arg3: memref<4x128xf32, #tpu.memory_space<vmem>>) attributes {dimension_semantics = [], scalar_prefetch = 0 : i64, scratch_operands = 0 : i64, tpu.core_type = #tpu.core_type<tc>} {
    %c0 = arith.constant 0 : index
    %c0_0 = arith.constant 0 : index
    %0 = vector.load %arg0[%c0, %c0_0] : memref<48x32xf32, #tpu.memory_space<vmem>>, vector<48x32xf32>
    %c0_1 = arith.constant 0 : index
    %c0_2 = arith.constant 0 : index
    %1 = vector.load %arg1[%c0_1, %c0_2] : memref<32x128xf32, #tpu.memory_space<vmem>>, vector<32x128xf32>
    %c0_3 = arith.constant 0 : index
    %c0_4 = arith.constant 0 : index
    %2 = vector.load %arg2[%c0_3, %c0_4] : memref<102x32xf32, #tpu.memory_space<vmem>>, vector<102x32xf32>
    %3 = vector.extract_strided_slice %2 {offsets = [0, 0], sizes = [32, 32], strides = [1, 1]} : vector<102x32xf32> to vector<32x32xf32>
    %4 = vector.extract_strided_slice %2 {offsets = [32, 0], sizes = [64, 32], strides = [1, 1]} : vector<102x32xf32> to vector<64x32xf32>
    %5 = vector.shape_cast %4 : vector<64x32xf32> to vector<8x8x32xf32>
    %6 = vector.extract_strided_slice %2 {offsets = [96, 0], sizes = [1, 32], strides = [1, 1]} : vector<102x32xf32> to vector<1x32xf32>
    %7 = vector.extract_strided_slice %2 {offsets = [97, 0], sizes = [1, 32], strides = [1, 1]} : vector<102x32xf32> to vector<1x32xf32>
    %8 = vector.extract_strided_slice %2 {offsets = [98, 0], sizes = [1, 32], strides = [1, 1]} : vector<102x32xf32> to vector<1x32xf32>
    %9 = vector.extract_strided_slice %2 {offsets = [99, 0], sizes = [1, 32], strides = [1, 1]} : vector<102x32xf32> to vector<1x32xf32>
    %10 = vector.extract_strided_slice %2 {offsets = [100, 0], sizes = [1, 32], strides = [1, 1]} : vector<102x32xf32> to vector<1x32xf32>
    %11 = vector.extract_strided_slice %2 {offsets = [101, 0], sizes = [1, 32], strides = [1, 1]} : vector<102x32xf32> to vector<1x32xf32>
    %12 = vector.extract_strided_slice %0 {offsets = [0, 0], sizes = [16, 32], strides = [1, 1]} : vector<48x32xf32> to vector<16x32xf32>
    %cst = arith.constant dense<0.000000e+00> : vector<48x128xf32>
    %13 = tpu.matmul %0, %1, %cst {dimension_numbers = #tpu.dot_dimension_numbers<[1], [0], [0], [1], [0, 0, 1, 1], [], []>} : vector<48x32xf32>, vector<32x128xf32>, vector<48x128xf32> -> vector<48x128xf32>
    %14 = vector.extract_strided_slice %13 {offsets = [0, 0], sizes = [16, 32], strides = [1, 1]} : vector<48x128xf32> to vector<16x32xf32>
    %15 = vector.broadcast %6 : vector<1x32xf32> to vector<16x32xf32>
    %16 = arith.addf %14, %15 : vector<16x32xf32>
    %17 = vector.extract_strided_slice %13 {offsets = [16, 32], sizes = [16, 32], strides = [1, 1]} : vector<48x128xf32> to vector<16x32xf32>
    %18 = vector.broadcast %7 : vector<1x32xf32> to vector<16x32xf32>
    %19 = arith.addf %17, %18 : vector<16x32xf32>
    %20 = vector.extract_strided_slice %13 {offsets = [32, 64], sizes = [16, 32], strides = [1, 1]} : vector<48x128xf32> to vector<16x32xf32>
    %21 = vector.broadcast %8 : vector<1x32xf32> to vector<16x32xf32>
    %22 = arith.addf %20, %21 : vector<16x32xf32>
    %23 = vector.shape_cast %16 : vector<16x32xf32> to vector<2x8x32xf32>
    %24 = vector.shape_cast %19 : vector<16x32xf32> to vector<2x8x32xf32>
    %25 = vector.shape_cast %22 : vector<16x32xf32> to vector<2x8x32xf32>
    %26 = vector.shape_cast %23 : vector<2x8x32xf32> to vector<2x8x1x32xf32>
    %27 = vector.shape_cast %24 : vector<2x8x32xf32> to vector<2x1x8x32xf32>
    %28 = vector.broadcast %26 : vector<2x8x1x32xf32> to vector<2x8x8x32xf32>
    %29 = vector.broadcast %27 : vector<2x1x8x32xf32> to vector<2x8x8x32xf32>
    %30 = arith.mulf %28, %29 : vector<2x8x8x32xf32>
    %31 = vector.shape_cast %30 : vector<2x8x8x32xf32> to vector<128x32xf32>
    %cst_5 = arith.constant dense<0.000000e+00> : vector<128x32xf32>
    %32 = tpu.matmul %31, %3, %cst_5 {dimension_numbers = #tpu.dot_dimension_numbers<[1], [0], [0], [1], [0, 0, 1, 1], [], []>} : vector<128x32xf32>, vector<32x32xf32>, vector<128x32xf32> -> vector<128x32xf32>
    %33 = vector.shape_cast %32 : vector<128x32xf32> to vector<2x8x8x32xf32>
    %34 = vector.shape_cast %5 : vector<8x8x32xf32> to vector<1x8x8x32xf32>
    %35 = vector.broadcast %34 : vector<1x8x8x32xf32> to vector<2x8x8x32xf32>
    %36 = arith.mulf %33, %35 : vector<2x8x8x32xf32>
    %cst_6 = arith.constant dense<0xFF800000> : vector<2x8x32xf32>
    %37 = vector.multi_reduction <maximumf>, %36, %cst_6 [2] : vector<2x8x8x32xf32> to vector<2x8x32xf32>
    %38 = vector.shape_cast %37 : vector<2x8x32xf32> to vector<2x8x1x32xf32>
    %39 = vector.broadcast %38 : vector<2x8x1x32xf32> to vector<2x8x8x32xf32>
    %40 = arith.subf %36, %39 : vector<2x8x8x32xf32>
    %41 = math.exp %40 : vector<2x8x8x32xf32>
    %cst_7 = arith.constant dense<0.000000e+00> : vector<2x8x32xf32>
    %42 = vector.multi_reduction <add>, %41, %cst_7 [2] : vector<2x8x8x32xf32> to vector<2x8x32xf32>
    %43 = vector.shape_cast %42 : vector<2x8x32xf32> to vector<2x8x1x32xf32>
    %44 = vector.broadcast %43 : vector<2x8x1x32xf32> to vector<2x8x8x32xf32>
    %45 = arith.divf %41, %44 : vector<2x8x8x32xf32>
    %46 = arith.negf %30 : vector<2x8x8x32xf32>
    %47 = math.exp %46 : vector<2x8x8x32xf32>
    %cst_8 = arith.constant 1.000000e+00 : f32
    %48 = vector.broadcast %cst_8 : f32 to vector<2x8x8x32xf32>
    %49 = arith.addf %48, %47 : vector<2x8x8x32xf32>
    %50 = arith.divf %48, %49 : vector<2x8x8x32xf32>
    %51 = vector.shape_cast %25 : vector<2x8x32xf32> to vector<2x1x8x32xf32>
    %52 = vector.broadcast %51 : vector<2x1x8x32xf32> to vector<2x8x8x32xf32>
    %53 = arith.mulf %50, %52 : vector<2x8x8x32xf32>
    %54 = arith.mulf %45, %53 : vector<2x8x8x32xf32>
    %cst_9 = arith.constant dense<0.000000e+00> : vector<2x8x32xf32>
    %55 = vector.multi_reduction <add>, %54, %cst_9 [2] : vector<2x8x8x32xf32> to vector<2x8x32xf32>
    %56 = vector.shape_cast %55 : vector<2x8x32xf32> to vector<16x32xf32>
    %57 = vector.extract_strided_slice %1 {offsets = [0, 96], sizes = [32, 32], strides = [1, 1]} : vector<32x128xf32> to vector<32x32xf32>
    %cst_10 = arith.constant dense<0.000000e+00> : vector<16x32xf32>
    %58 = tpu.matmul %56, %57, %cst_10 {dimension_numbers = #tpu.dot_dimension_numbers<[1], [0], [0], [1], [0, 0, 1, 1], [], []>} : vector<16x32xf32>, vector<32x32xf32>, vector<16x32xf32> -> vector<16x32xf32>
    %59 = vector.broadcast %9 : vector<1x32xf32> to vector<16x32xf32>
    %60 = arith.addf %58, %59 : vector<16x32xf32>
    %61 = arith.mulf %16, %60 : vector<16x32xf32>
    %62 = arith.negf %61 : vector<16x32xf32>
    %63 = math.exp %62 : vector<16x32xf32>
    %cst_11 = arith.constant 1.000000e+00 : f32
    %64 = vector.broadcast %cst_11 : f32 to vector<16x32xf32>
    %65 = arith.addf %64, %63 : vector<16x32xf32>
    %66 = arith.divf %64, %65 : vector<16x32xf32>
    %67 = arith.mulf %66, %60 : vector<16x32xf32>
    %68 = arith.addf %12, %67 : vector<16x32xf32>
    %cst_12 = arith.constant dense<0.000000e+00> : vector<16xf32>
    %69 = vector.multi_reduction <add>, %68, %cst_12 [1] : vector<16x32xf32> to vector<16xf32>
    %70 = vector.shape_cast %69 : vector<16xf32> to vector<16x1xf32>
    %cst_13 = arith.constant 3.200000e+01 : f32
    %71 = vector.broadcast %cst_13 : f32 to vector<16x1xf32>
    %72 = arith.divf %70, %71 : vector<16x1xf32>
    %73 = vector.broadcast %72 : vector<16x1xf32> to vector<16x32xf32>
    %74 = arith.subf %68, %73 : vector<16x32xf32>
    %75 = arith.mulf %74, %74 : vector<16x32xf32>
    %cst_14 = arith.constant dense<0.000000e+00> : vector<16xf32>
    %76 = vector.multi_reduction <add>, %75, %cst_14 [1] : vector<16x32xf32> to vector<16xf32>
    %77 = vector.shape_cast %76 : vector<16xf32> to vector<16x1xf32>
    %cst_15 = arith.constant 3.200000e+01 : f32
    %78 = vector.broadcast %cst_15 : f32 to vector<16x1xf32>
    %79 = arith.divf %77, %78 : vector<16x1xf32>
    %80 = vector.broadcast %72 : vector<16x1xf32> to vector<16x32xf32>
    %81 = arith.subf %68, %80 : vector<16x32xf32>
    %cst_16 = arith.constant 9.99999974E-6 : f32
    %82 = vector.broadcast %cst_16 : f32 to vector<16x1xf32>
    %83 = arith.addf %79, %82 : vector<16x1xf32>
    %84 = math.rsqrt %83 : vector<16x1xf32>
    %85 = vector.broadcast %84 : vector<16x1xf32> to vector<16x32xf32>
    %86 = arith.mulf %81, %85 : vector<16x32xf32>
    %87 = vector.broadcast %10 : vector<1x32xf32> to vector<16x32xf32>
    %88 = arith.mulf %86, %87 : vector<16x32xf32>
    %89 = vector.broadcast %11 : vector<1x32xf32> to vector<16x32xf32>
    %90 = arith.addf %88, %89 : vector<16x32xf32>
    %91 = vector.extract_strided_slice %90 {offsets = [0, 0], sizes = [4, 32], strides = [1, 1]} : vector<16x32xf32> to vector<4x32xf32>
    %92 = vector.extract_strided_slice %90 {offsets = [4, 0], sizes = [4, 32], strides = [1, 1]} : vector<16x32xf32> to vector<4x32xf32>
    %93 = vector.extract_strided_slice %90 {offsets = [8, 0], sizes = [4, 32], strides = [1, 1]} : vector<16x32xf32> to vector<4x32xf32>
    %94 = vector.extract_strided_slice %90 {offsets = [12, 0], sizes = [4, 32], strides = [1, 1]} : vector<16x32xf32> to vector<4x32xf32>
    %95 = tpu.concatenate %91, %92, %93, %94 in 1 : vector<4x32xf32>, vector<4x32xf32>, vector<4x32xf32>, vector<4x32xf32> -> vector<4x128xf32>
    %c0_17 = arith.constant 0 : index
    %c0_18 = arith.constant 0 : index
    %96 = vector.load %arg3[%c0_17, %c0_18] : memref<4x128xf32, #tpu.memory_space<vmem>>, vector<4x128xf32>
    tpu.vector_store %arg3[%c0_17, %c0_18], %95 {strides = array<i32>} : memref<4x128xf32, #tpu.memory_space<vmem>>, vector<4x128xf32>,
    return
  }
}

</mosaic_0001>

<bundles_post_ra>
// kernel: mha_encoder.1
= control target key start
LH: loop header
LB: loop body
LE: loop exit
PB: predicated region body
PF: predicated region fallthrough
CT: control target
= control target key end

     0   :  { %vm37_vm0 = vcmask 261120   ;;  %v151_v0 = vlaneseq  ;;  %s1651_s28 = smov 32   ;;  %s1652_s15 = smov 96   ;;  %v1654_v29 = vmov 1966171168   ;;  %vm1162_vm1 = vcmask 1041409   ;;  %s2227_s1 = inlined_call_operand.vmem [shape: f32[32,128], index: 1, kind: input, shape index: {}]   ;;  %s2228_s0 = inlined_call_operand.vmem [shape: f32[48,32], index: 0, kind: input, shape index: {}]   ;;  %s2229_s2 = inlined_call_operand.vmem [shape: f32[102,32], index: 2, kind: input, shape index: {}]   ;;  %s2230_s3 = inlined_call_operand.vmem [shape: f32[4,128], index: 3, kind: output, shape index: {}]  }
   0x1   :  { %v1678_v1 = vld [vmem:[%s2227_s1 + $0x18] sm:$0xff]  ;;  %v1683_v2 = vld [vmem:[%s2227_s1 + $0x10] sm:$0xff]  ;;  %v14_v3 = vld [vmem:[%s2228_s0] sm:$0xff]  ;;  %s1653_s16 = smov 64   ;;  %v181_v30 = vunpack.c.l.s4 %v1654_v29  ;;  %vm1164_vm2 = vcmask 1042434   ;;  %vm1166_vm3 = vcmask 1043459  }
   0x2   :  { %1436 = vmatprep.subr.mxu0 %v1678_v1  ;;  %v1689_v4 = vshrl.u32 %v151_v0, 7  ;;  %v1695_v5 = vld [vmem:[%s2227_s1 + $0x8] sm:$0xff]  ;;  %1444 = vmatprep.mubr.msk.f32.mxu0 %vm37_vm0, %v14_v3  ;;  %v36_v6 = vld [vmem:[%s2229_s2 + $0x60] sm:$0x3f]  ;;  %v16_v11 = vld [vmem:[%s2228_s0 + $0x10] sm:$0xff]  ;;  %vm1168_vm4 = vcmask 1044484  }
   0x3   :  { %1437 = vmatpush3.msra.mxu0 %v1678_v1  ;;  %v1707_v8 = vld [vmem:[%s2227_s1] sm:$0xff]  ;;  %v15_v10 = vld [vmem:[%s2228_s0 + $0x8] sm:$0xff]  ;;  %v17_v12 = vld [vmem:[%s2228_s0 + $0x18] sm:$0xff]  ;;  %v182_v33 = vunpack.c.0.s8 %v181_v30  ;;  %vm1170_vm5 = vcmask 1045509   ;;  %vm1172_vm6 = vcmask 1046534   ;;  %vm1174_vm7 = vcmask 1047559  }
   0x4   :  { %2235 = vst [vmem:[#allocation2_spill] sm:$0xff] %v1689_v4  ;;  %1438 = vmatprep.subr.mxu0 %v1683_v2  ;;  %v159_v7 = vsub.s32 1, %v1689_v4  ;;  %v18_v13 = vld [vmem:[%s2228_s0 + $0x20] sm:$0xff]  ;;  %v19_v14 = vld [vmem:[%s2228_s0 + $0x28] sm:$0xff]  ;;  %v27_v15 = vld [vmem:[%s2229_s2 + $0x18] sm:$0xff]  ;;  %v169_v23 = vsub.s32 2, %v1689_v4 }
   0x5   :  { %1439 = vmatpush3.msra.mxu0 %v1683_v2  ;;  %v26_v16 = vld [vmem:[%s2229_s2 + $0x10] sm:$0xff]  ;;  %1496 = vmatprep.subr.mxu1 %v27_v15  ;;  %v25_v17 = vld [vmem:[%s2229_s2 + $0x8] sm:$0xff]  ;;  %v24_v18 = vld [vmem:[%s2229_s2] sm:$0xff]  ;;  %v1751_v28 = vsub.s32 0, %v1689_v4  ;;  %v1759_v35 = vsub.s32 %v182_v33, %v1689_v4  ;;  %vm1349_vm8 = vcmask 523264   ;;  %vm1351_vm9 = vcmask 785408  }
   0x6   :  { %1440 = vmatprep.subr.mxu0 %v1695_v5  ;;  %v160_v9 = vrot.slane %v36_v6, %v159_v7  ;;  %1500 = vmatpush3.msra.mxu1 %v27_v15  ;;  %v170_v26 = vrot.slane %v36_v6, %v169_v23 }
   0x7   :  { %1441 = vmatpush3.msra.mxu0 %v1695_v5  ;;  %1497 = vmatprep.subr.mxu1 %v26_v16  ;;  %v154_v31 = vrot.slane %v36_v6, %v1751_v28 }
   0x8   :  { %1442 = vmatprep.subr.mxu0 %v1707_v8  ;;  %162 = vrot.lane.b32.xlu0 %v160_v9, %s1651_s28 }
   0x9   :  { %1443 = vmatpush3.msra.mxu0 %v1707_v8  ;;  %1501 = vmatpush3.msra.mxu1 %v26_v16 }
   0xa   :  { %1445 = vmatmul.mubr.msk.f32.vlgmr.msra.gmra.mxu0 %vm37_vm0, %v15_v10  ;;  %1453 = vmatprep.subr.mxu0 %v27_v15 }
   0xb   :  { %1447 = vmatprep.mubr.msk.f32.mxu0 %vm37_vm0, %v16_v11  ;;  %1454 = vmatpush3.msra.mxu0 %v27_v15 }
   0xc   :  { %1455 = vmatprep.subr.mxu0 %v26_v16  ;;  %1498 = vmatprep.subr.mxu1 %v25_v17 }
   0xd   :  { %1456 = vmatpush3.msra.mxu0 %v26_v16  ;;  %1502 = vmatpush3.msra.mxu1 %v25_v17 }
   0xe   :  { %1448 = vmatmul.mubr.msk.f32.gmra.mxu0 %vm37_vm0, %v17_v12  ;;  %1457 = vmatprep.subr.mxu0 %v25_v17 }
   0xf   :  { %1450 = vmatprep.mubr.msk.f32.mxu0 %vm37_vm0, %v18_v13  ;;  %1458 = vmatpush3.msra.mxu0 %v25_v17 }
  0x10   :  { %1459 = vmatprep.subr.mxu0 %v24_v18  ;;  %1499 = vmatprep.subr.mxu1 %v24_v18 }
  0x11   :  { %1460 = vmatpush3.msra.mxu0 %v24_v18  ;;  %1503 = vmatpush3.msra.mxu1 %v24_v18 }
  0x12   :  { %1451 = vmatmul.mubr.msk.f32.gmra.mxu0 %vm37_vm0, %v19_v14 }
  0x7a   :  { %v163_v21 = vpop.permute.xlu0 %162 }
  0xca   :  { %v1446_v19 = vpop.f32.mrf.mxu0 }
  0xcb   :  { %v1764_v38 = vadd.f32 %v1446_v19, %v154_v31 }
  0xcc   :  { %v122_v20 = vpop.f32.mrf.mxu0 }
  0xcd   :  { %v1754_v32 = vadd.f32 %v154_v31, %v122_v20  ;;  %2237 = vst [vmem:[#allocation4_spill] sm:$0xff] %v1764_v38  ;;  %v235_v43 = vrot.slane %v1764_v38, %v1759_v35  ;;  %v228_v50 = vcombine.high %v1764_v38, %v1764_v38 }
  0xce   :  { %v1449_v22 = vpop.f32.mrf.mxu0 }
  0xcf   :  { %v166_v24 = vadd.f32 %v1449_v22, %v163_v21  ;;  %2236 = vst [vmem:[#allocation3_spill] sm:$0xff] %v1754_v32  ;;  %v179_v34 = vcombine.high %v1754_v32, %v1754_v32  ;;  %v186_v36 = vrot.slane %v1754_v32, %v1759_v35  ;;  %v243_v51 = vcombine.high %v235_v43, %v235_v43 }
  0xd0   :  { %v132_v25 = vpop.f32.mrf.mxu0  ;;  %v251_v52 = vrot.slane %v235_v43, %v1759_v35  ;;  %v242_v11 = vrot.slane %v228_v50, %v1759_v35 }
  0xd1   :  { %361 = vrot.lane.b32.xlu1 %v166_v24, %s1652_s15  ;;  %v165_v27 = vadd.f32 %v163_v21, %v132_v25  ;;  %v193_v37 = vrot.slane %v179_v34, %v1759_v35  ;;  %v194_v39 = vcombine.high %v186_v36, %v186_v36  ;;  %v202_v41 = vrot.slane %v186_v36, %v1759_v35 }
  0xd2   :  { %v1452_v46 = vpop.f32.mrf.mxu0  ;;  %v265_v14 = vrot.slane %v243_v51, %v1759_v35  ;;  %v273_v17 = vcombine.high %v251_v52, %v251_v52  ;;  %v312_v18 = vrot.slane %v251_v52, %v1751_v28  ;;  %v244_v22 = vcombine.high %v242_v11, %v242_v11 }
  0xd3   :  { %359 = vrot.lane.b32.xlu0 %v165_v27, %s1652_s15  ;;  %v195_v40 = vcombine.high %v193_v37, %v193_v37  ;;  %v209_v42 = vrot.slane %v193_v37, %v1759_v35  ;;  %v216_v44 = vrot.slane %v194_v39, %v1759_v35  ;;  %v224_v47 = vcombine.high %v202_v41, %v202_v41 }
  0xd4   :  { %v280_v53 = vrot.slane %v202_v41, %v1751_v28  ;;  %v142_v55 = vpop.f32.mrf.mxu0  ;;  %v275_v23 = vcombine.high %v265_v14, %v265_v14  ;;  %v316_v24 = vrot.slane %v265_v14, %v1751_v28  ;;  %v258_v25 = vrot.slane %v242_v11, %v1759_v35 }
  0xd5   :  { %172 = vrot.lane.b32.xlu1 %v170_v26, %s1653_s16  ;;  %v223_v45 = vrot.slane %v195_v40, %v1759_v35  ;;  %v225_v48 = vcombine.high %v209_v42, %v209_v42  ;;  %v284_v54 = vrot.slane %v216_v44, %v1751_v28  ;;  %v296_v56 = vrot.slane %v209_v42, %v1751_v28 }
  0xd6   :  { %v226_v58 = vcombine.high %v216_v44, %v216_v44  ;;  %v288_v60 = vrot.slane %v224_v47, %v1751_v28  ;;  %v320_v26 = vrot.slane %v273_v17, %v1751_v28  ;;  %v272_v30 = vrot.slane %v244_v22, %v1759_v35 }
  0xd7   :  { %v300_v57 = vrot.slane %v223_v45, %v1751_v28  ;;  %v304_v61 = vrot.slane %v225_v48, %v1751_v28  ;;  %v227_v62 = vcombine.high %v223_v45, %v223_v45  ;;  %v324_v31 = vrot.slane %v275_v23, %v1751_v28 }
  0xd8   :  { %v292_v15 = vrot.slane %v226_v58, %v1751_v28  ;;  %v274_v33 = vcombine.high %v258_v25, %v258_v25  ;;  %v328_v34 = vrot.slane %v258_v25, %v1751_v28  ;;  %v276_v35 = vcombine.high %v272_v30, %v272_v30 }
  0xd9   :  { %v308_v16 = vrot.slane %v227_v62, %v1751_v28 }
  0xda   :  { %v336_v37 = vrot.slane %v274_v33, %v1751_v28  ;;  %v1854_v33 = vld [vmem:[%s2229_s2 + $0x28] sm:$0xff] }
 0x143   :  { %v1772_v49 = vpop.permute.xlu1 %361 }
 0x144   :  { %v373_v21 = vmul.f32 %v1772_v49, %v312_v18  ;;  %v374_v27 = vmul.f32 %v1772_v49, %v316_v24  ;;  %v375_v29 = vmul.f32 %v1772_v49, %v320_v26  ;;  %v376_v36 = vmul.f32 %v1772_v49, %v324_v31 }
 0x145   :  { %v360_v59 = vpop.permute.xlu0 %359  ;;  %v379_v40 = vmul.f32 %v1772_v49, %v336_v37  ;;  %v1864_v37 = vld [vmem:[%s2229_s2 + $0x20] sm:$0xff] }
 0x146   :  { %v365_v0 = vmul.f32 %v360_v59, %v280_v53  ;;  %v1783_v3 = vmul.f32 %v360_v59, %v296_v56  ;;  %v1785_v6 = vmul.f32 %v360_v59, %v284_v54  ;;  %v1787_v7 = vmul.f32 %v360_v59, %v300_v57 }
 0x147   :  { %v173_v63 = vpop.permute.xlu1 %172  ;;  %v367_v12 = vmul.f32 %v360_v59, %v288_v60  ;;  %v1793_v13 = vmul.f32 %v360_v59, %v304_v61  ;;  %v368_v19 = vmul.f32 %v360_v59, %v292_v15  ;;  %v372_v20 = vmul.f32 %v360_v59, %v308_v16 }
 0x148   :  { %v176_v9 = vadd.f32 %v1452_v46, %v173_v63  ;;  %v175_v10 = vadd.f32 %v173_v63, %v142_v55  ;;  %1461 = vmatprep.mubr.msk.f32.mxu0 %vm37_vm0, %v365_v0  ;;  %1467 = vmatprep.mubr.msk.f32.mxu1 %vm37_vm0, %v1783_v3  ;;  %v1388_v41 = vmul.f32 -1.442695, %v373_v21  ;;  %v1389_v42 = vmul.f32 -1.442695, %v374_v27 }
 0x149   :  { %1462 = vmatmul.mubr.msk.f32.vlgmr.msra.gmra.mxu0 %vm37_vm0, %v1785_v6  ;;  %1468 = vmatmul.mubr.msk.f32.vlgmr.msra.gmra.mxu1 %vm37_vm0, %v1787_v7  ;;  %v1390_v43 = vmul.f32 -1.442695, %v375_v29  ;;  %v1391_v44 = vmul.f32 -1.442695, %v376_v36  ;;  %v1380_v45 = vmul.f32 -1.442695, %v365_v0 }
 0x14a   :  { %1464 = vmatprep.mubr.msk.f32.mxu0 %vm37_vm0, %v367_v12  ;;  %1470 = vmatprep.mubr.msk.f32.mxu1 %vm37_vm0, %v1793_v13  ;;  %1508 = vpow2.f32 %v1388_v41  ;;  %v1384_v46 = vmul.f32 -1.442695, %v1783_v3  ;;  %v1381_v47 = vmul.f32 -1.442695, %v1785_v6  ;;  %v1382_v48 = vmul.f32 -1.442695, %v367_v12 }
 0x14b   :  { %994 = vrot.lane.b32.xlu1 %v176_v9, %s1653_s16  ;;  %992 = vrot.lane.b32.xlu0 %v175_v10, %s1653_s16  ;;  %1510 = vpow2.f32 %v1389_v42  ;;  %v1383_v50 = vmul.f32 -1.442695, %v368_v19  ;;  %v1387_v51 = vmul.f32 -1.442695, %v372_v20  ;;  %v1394_v54 = vmul.f32 -1.442695, %v379_v40 }
 0x14c   :  { %1512 = vpow2.f32 %v1390_v43 }
 0x14d   :  { %1465 = vmatmul.mubr.msk.f32.gmra.mxu0 %vm37_vm0, %v368_v19  ;;  %1471 = vmatmul.mubr.msk.f32.gmra.mxu1 %vm37_vm0, %v372_v20  ;;  %1514 = vpow2.f32 %v1391_v44 }
 0x14e   :  { %1473 = vmatprep.mubr.msk.f32.mxu1 %vm37_vm0, %v373_v21  ;;  %1516 = vpow2.f32 %v1380_v45 }
 0x14f   :  { %1193 = vrot.lane.b32.xlu0 %v1678_v1, %s1651_s28  ;;  %1191 = vrot.lane.b32.xlu1 %v1683_v2, %s1651_s28  ;;  %v377_v1 = vmul.f32 %v1772_v49, %v328_v34  ;;  %v332_v2 = vrot.slane %v272_v30, %v1751_v28  ;;  %1518 = vpow2.f32 %v1384_v46  ;;  %v1859_v34 = vld [vmem:[%s2229_s2 + $0x48] sm:$0xff] }
 0x150   :  { %1520 = vpow2.f32 %v1381_v47  ;;  %v1886_v47 = vld [vmem:[%s2229_s2 + $0x38] sm:$0xff] }
 0x151   :  { %1474 = vmatmul.mubr.msk.f32.gmra.mxu1 %vm37_vm0, %v374_v27  ;;  %v378_v39 = vmul.f32 %v1772_v49, %v332_v2  ;;  %v1392_v52 = vmul.f32 -1.442695, %v377_v1 }
 0x152   :  { %1476 = vmatprep.mubr.msk.f32.mxu1 %vm37_vm0, %v375_v29 }
 0x153   :  { %1189 = vrot.lane.b32.xlu0 %v1695_v5, %s1651_s28  ;;  %1187 = vrot.lane.b32.xlu1 %v1707_v8, %s1651_s28  ;;  %v340_v5 = vrot.slane %v276_v35, %v1751_v28  ;;  %v1385_v28 = vmul.f32 -1.442695, %v1787_v7  ;;  %v1393_v53 = vmul.f32 -1.442695, %v378_v39 }
 0x155   :  { %1477 = vmatmul.mubr.msk.f32.gmra.mxu1 %vm37_vm0, %v376_v36  ;;  %v380_v8 = vmul.f32 %v1772_v49, %v340_v5  ;;  %v1386_v49 = vmul.f32 -1.442695, %v1793_v13  ;;  %1522 = vpow2.f32 %v1385_v28  ;;  %v1891_v28 = vld [vmem:[%s2229_s2 + $0x58] sm:$0xff] }
 0x156   :  { %1479 = vmatprep.mubr.msk.f32.mxu1 %vm37_vm0, %v377_v1  ;;  %1524 = vpow2.f32 %v1382_v48 }
 0x157   :  { %1526 = vpow2.f32 %v1386_v49  ;;  %v1395_v55 = vmul.f32 -1.442695, %v380_v8  ;;  %v1509_v56 = vpop.eup %1508 }
 0x158   :  { %1528 = vpow2.f32 %v1383_v50  ;;  %v1511_v57 = vpop.eup %1510  ;;  %v950_v60 = vadd.f32 1.0, %v1509_v56 }
 0x159   :  { %1480 = vmatmul.mubr.msk.f32.gmra.mxu1 %vm37_vm0, %v378_v39  ;;  %1530 = vpow2.f32 %v1387_v51  ;;  %v1513_v58 = vpop.eup %1512  ;;  %v951_v62 = vadd.f32 1.0, %v1511_v57  ;;  %v1869_v39 = vld [vmem:[%s2229_s2 + $0x40] sm:$0xff] }
 0x15a   :  { %1482 = vmatprep.mubr.msk.f32.mxu1 %vm37_vm0, %v379_v40  ;;  %1532 = vpow2.f32 %v1392_v52  ;;  %v1515_v59 = vpop.eup %1514  ;;  %v952_v0 = vadd.f32 1.0, %v1513_v58 }
 0x15b   :  { %1534 = vpow2.f32 %v1393_v53  ;;  %v1517_v61 = vpop.eup %1516  ;;  %v953_v6 = vadd.f32 1.0, %v1515_v59 }
 0x15c   :  { %1536 = vpow2.f32 %v1394_v54  ;;  %v1519_v63 = vpop.eup %1518  ;;  %v942_v9 = vadd.f32 1.0, %v1517_v61  ;;  %v1914_v61 = vld [vmem:[%s2229_s2 + $0x30] sm:$0xff] }
 0x15d   :  { %1483 = vmatmul.mubr.msk.f32.gmra.mxu1 %vm37_vm0, %v380_v8  ;;  %1538 = vpow2.f32 %v1395_v55  ;;  %v1521_v3 = vpop.eup %1520  ;;  %v946_v11 = vadd.f32 1.0, %v1519_v63 }
 0x15e   :  { %1540 = vrcp.f32 %v950_v60  ;;  %v943_v13 = vadd.f32 1.0, %v1521_v3 }
 0x15f   :  { %1542 = vrcp.f32 %v951_v62  ;;  %v1919_v62 = vld [vmem:[%s2229_s2 + $0x50] sm:$0xff] }
 0x160   :  { %1544 = vrcp.f32 %v952_v0 }
 0x161   :  { %1546 = vrcp.f32 %v953_v6 }
 0x162   :  { %v1523_v7 = vpop.eup %1522  ;;  %1548 = vrcp.f32 %v942_v9 }
 0x163   :  { %v1525_v10 = vpop.eup %1524  ;;  %v947_v15 = vadd.f32 1.0, %v1523_v7  ;;  %1550 = vrcp.f32 %v946_v11 }
 0x164   :  { %v1527_v12 = vpop.eup %1526  ;;  %v944_v17 = vadd.f32 1.0, %v1525_v10  ;;  %1552 = vrcp.f32 %v943_v13 }
 0x165   :  { %v1529_v14 = vpop.eup %1528  ;;  %v948_v19 = vadd.f32 1.0, %v1527_v12  ;;  %1554 = vrcp.f32 %v947_v15 }
 0x166   :  { %v1531_v16 = vpop.eup %1530  ;;  %v945_v21 = vadd.f32 1.0, %v1529_v14  ;;  %1556 = vrcp.f32 %v944_v17 }
 0x167   :  { %v1533_v18 = vpop.eup %1532  ;;  %v949_v23 = vadd.f32 1.0, %v1531_v16  ;;  %1558 = vrcp.f32 %v948_v19 }
 0x168   :  { %v1535_v20 = vpop.eup %1534  ;;  %v954_v26 = vadd.f32 1.0, %v1533_v18  ;;  %1560 = vrcp.f32 %v945_v21 }
 0x169   :  { %v1537_v22 = vpop.eup %1536  ;;  %v955_v27 = vadd.f32 1.0, %v1535_v20  ;;  %1562 = vrcp.f32 %v949_v23 }
 0x16a   :  { %v1539_v25 = vpop.eup %1538  ;;  %v956_v29 = vadd.f32 1.0, %v1537_v22  ;;  %1564 = vrcp.f32 %v954_v26 }
 0x16b   :  { %v957_v31 = vadd.f32 1.0, %v1539_v25  ;;  %v1541_v1 = vpop.eup %1540  ;;  %1566 = vrcp.f32 %v955_v27 }
 0x16c   :  { %v1543_v40 = vpop.eup %1542  ;;  %1568 = vrcp.f32 %v956_v29 }
 0x16d   :  { %v1545_v42 = vpop.eup %1544  ;;  %1570 = vrcp.f32 %v957_v31 }
 0x16e   :  { %v1547_v48 = vpop.eup %1546 }
 0x16f   :  { %v1903_v54 = vpop.eup %1548 }
 0x170   :  { %v1921_v63 = vpop.eup %1550 }
 0x171   :  { %v1933_v10 = vpop.eup %1552 }
 0x172   :  { %v1935_v17 = vpop.eup %1554 }
 0x173   :  { %v1947_v22 = vpop.eup %1556 }
 0x174   :  { %v1949_v31 = vpop.eup %1558 }
 0x1bd   :  { %v1847_v24 = vpop.permute.xlu0 %992  ;;  %v1849_v30 = vpop.permute.xlu1 %994 }
 0x1be   :  { %v1878_v43 = vmul.f32 %v1541_v1, %v1849_v30  ;;  %v1881_v44 = vmul.f32 %v1543_v40, %v1849_v30  ;;  %v1906_v55 = vmul.f32 %v1545_v42, %v1849_v30  ;;  %v1909_v56 = vmul.f32 %v1547_v48, %v1849_v30  ;;  %v1955_v40 = vpop.eup %1560 }
 0x1c0   :  { %2238 = vst [vmem:[#allocation5_spill] sm:$0xff] %v1878_v43  ;;  %2239 = vst [vmem:[#allocation6_spill] sm:$0xff] %v1906_v55 }
 0x1c1   :  { %v1194_v36 = vpop.permute.xlu0 %1193  ;;  %v1192_v41 = vpop.permute.xlu1 %1191  ;;  %2240 = vst [vmem:[#allocation7_spill] sm:$0xff] %v1909_v56 }
 0x1c2   :  { %1485 = vmatprep.subr.mxu0 %v1194_v36 }
 0x1c3   :  { %1486 = vmatpush3.msra.mxu0 %v1194_v36 }
 0x1c4   :  { %1487 = vmatprep.subr.mxu0 %v1192_v41 }
 0x1c5   :  { %1488 = vmatpush3.msra.mxu0 %v1192_v41  ;;  %v1190_v53 = vpop.permute.xlu0 %1189  ;;  %v1188_v9 = vpop.permute.xlu1 %1187 }
 0x1c6   :  { %1489 = vmatprep.subr.mxu0 %v1190_v53 }
 0x1c7   :  { %1490 = vmatpush3.msra.mxu0 %v1190_v53 }
 0x1c8   :  { %1491 = vmatprep.subr.mxu0 %v1188_v9 }
 0x1c9   :  { %1492 = vmatpush3.msra.mxu0 %v1188_v9 }
 0x209   :  { %v1463_v2 = vpop.f32.mrf.mxu0  ;;  %v1469_v35 = vpop.f32.mrf.mxu1 }
 0x20a   :  { %v1872_v5 = vmul.f32 %v1463_v2, %v1854_v33  ;;  %v1875_v8 = vmul.f32 %v1469_v35, %v1859_v34 }
 0x20b   :  { %v495_v45 = vpop.f32.mrf.mxu0  ;;  %v515_v46 = vpop.f32.mrf.mxu1 }
 0x20c   :  { %v597_v49 = vsel %vm37_vm0, %v1872_v5, -inf  ;;  %v625_v50 = vsel %vm37_vm0, %v1875_v8, -inf  ;;  %v1898_v51 = vmul.f32 %v495_v45, %v1864_v37  ;;  %v1901_v52 = vmul.f32 %v515_v46, %v1869_v39 }
 0x20d   :  { %v598_v57 = vrot.slane %v597_v49, 4  ;;  %v626_v58 = vrot.slane %v625_v50, 4  ;;  %v1466_v59 = vpop.f32.mrf.mxu0  ;;  %v1472_v60 = vpop.f32.mrf.mxu1 }
 0x20e   :  { %v590_v0 = vsel %vm37_vm0, %v1898_v51, -inf  ;;  %v618_v3 = vsel %vm37_vm0, %v1901_v52, -inf  ;;  %v1928_v6 = vmul.f32 %v1466_v59, %v1886_v47  ;;  %v1931_v7 = vmul.f32 %v1472_v60, %v1891_v28 }
 0x20f   :  { %v599_v11 = vmax.f32 %v597_v49, %v598_v57  ;;  %v627_v12 = vmax.f32 %v625_v50, %v626_v58  ;;  %v591_v13 = vrot.slane %v590_v0, 4  ;;  %v619_v14 = vrot.slane %v618_v3, 4  ;;  %v505_v15 = vpop.f32.mrf.mxu0  ;;  %v525_v16 = vpop.f32.mrf.mxu1 }
 0x210   :  { %v611_v18 = vsel %vm37_vm0, %v1928_v6, -inf  ;;  %v639_v19 = vsel %vm37_vm0, %v1931_v7, -inf  ;;  %v1942_v20 = vmul.f32 %v505_v15, %v1914_v61  ;;  %v1945_v21 = vmul.f32 %v525_v16, %v1919_v62  ;;  %v1957_v49 = vpop.eup %1562 }
 0x211   :  { %v600_v23 = vrot.slane %v599_v11, 2  ;;  %v628_v25 = vrot.slane %v627_v12, 2  ;;  %v592_v26 = vmax.f32 %v590_v0, %v591_v13  ;;  %v620_v27 = vmax.f32 %v618_v3, %v619_v14  ;;  %v1475_v29 = vpop.f32.mrf.mxu1  ;;  %v1959_v59 = vpop.eup %1564 }
 0x212   :  { %v612_v36 = vrot.slane %v611_v18, 4  ;;  %v640_v1 = vrot.slane %v639_v19, 4  ;;  %v604_v2 = vsel %vm37_vm0, %v1942_v20, -inf  ;;  %v632_v35 = vsel %vm37_vm0, %v1945_v21, -inf  ;;  %v1961_v14 = vpop.eup %1566 }
 0x213   :  { %v601_v41 = vmax.f32 %v599_v11, %v600_v23  ;;  %v629_v42 = vmax.f32 %v627_v12, %v628_v25  ;;  %v593_v45 = vrot.slane %v592_v26, 2  ;;  %v621_v46 = vrot.slane %v620_v27, 2  ;;  %v535_v48 = vpop.f32.mrf.mxu1  ;;  %v1963_v23 = vpop.eup %1568 }
 0x214   :  { %v613_v50 = vmax.f32 %v611_v18, %v612_v36  ;;  %v641_v53 = vmax.f32 %v639_v19, %v640_v1  ;;  %v605_v57 = vrot.slane %v604_v2, 4  ;;  %v633_v58 = vrot.slane %v632_v35, 4  ;;  %2241 = vst [vmem:[#allocation8_spill] sm:$0xff] %v1963_v23  ;;  %v1965_v32 = vpop.eup %1570 }
 0x215   :  { %v602_v60 = vrot.slane %v601_v41, 1  ;;  %v630_v0 = vrot.slane %v629_v42, 1  ;;  %v594_v3 = vmax.f32 %v592_v26, %v593_v45  ;;  %v622_v9 = vmax.f32 %v620_v27, %v621_v46  ;;  %v1478_v13 = vpop.f32.mrf.mxu1  ;;  %2242 = vst [vmem:[#allocation9_spill] sm:$0xff] %v1965_v32 }
 0x216   :  { %v614_v11 = vrot.slane %v613_v50, 2  ;;  %v642_v12 = vrot.slane %v641_v53, 2  ;;  %v606_v15 = vmax.f32 %v604_v2, %v605_v57  ;;  %v634_v16 = vmax.f32 %v632_v35, %v633_v58 }
 0x217   :  { %v603_v25 = vmax.f32 %v601_v41, %v602_v60  ;;  %v631_v18 = vmax.f32 %v629_v42, %v630_v0  ;;  %v595_v19 = vrot.slane %v594_v3, 1  ;;  %v623_v36 = vrot.slane %v622_v9, 1  ;;  %v545_v1 = vpop.f32.mrf.mxu1 }
 0x218   :  { %v615_v38 = vmax.f32 %v613_v50, %v614_v11  ;;  %v643_v4 = vmax.f32 %v641_v53, %v642_v12  ;;  %v607_v26 = vrot.slane %v606_v15, 2  ;;  %v635_v27 = vrot.slane %v634_v16, 2 }
 0x219   :  { %v703_v45 = vsub.f32 %v1872_v5, %v603_v25  ;;  %v707_v46 = vsub.f32 %v1875_v8, %v631_v18  ;;  %v596_v55 = vmax.f32 %v594_v3, %v595_v19  ;;  %v624_v2 = vmax.f32 %v622_v9, %v623_v36  ;;  %v1481_v35 = vpop.f32.mrf.mxu1 }
 0x21a   :  { %v616_v57 = vrot.slane %v615_v38, 1  ;;  %v644_v58 = vrot.slane %v643_v4, 1  ;;  %v608_v41 = vmax.f32 %v606_v15, %v607_v26  ;;  %v636_v42 = vmax.f32 %v634_v16, %v635_v27 }
 0x21b   :  { %v720_v60 = vmul.f32 1.442695, %v703_v45  ;;  %v728_v0 = vmul.f32 1.442695, %v707_v46  ;;  %v702_v23 = vsub.f32 %v1898_v51, %v596_v55  ;;  %v706_v50 = vsub.f32 %v1901_v52, %v624_v2  ;;  %v555_v5 = vpop.f32.mrf.mxu1 }
 0x21c   :  { %v617_v53 = vmax.f32 %v615_v38, %v616_v57  ;;  %v645_v11 = vmax.f32 %v643_v4, %v644_v58  ;;  %v609_v12 = vrot.slane %v608_v41, 1  ;;  %v637_v32 = vrot.slane %v636_v42, 1 }
 0x21d   :  { %1572 = vpow2.f32 %v720_v60  ;;  %v718_v8 = vmul.f32 1.442695, %v702_v23  ;;  %v726_v3 = vmul.f32 1.442695, %v706_v50  ;;  %v1972_v9 = vmul.f32 %v1475_v29, %v1854_v33  ;;  %v1484_v29 = vpop.f32.mrf.mxu1 }
 0x21e   :  { %1574 = vpow2.f32 %v728_v0  ;;  %v705_v15 = vsub.f32 %v1928_v6, %v617_v53  ;;  %v709_v16 = vsub.f32 %v1931_v7, %v645_v11  ;;  %v610_v25 = vmax.f32 %v608_v41, %v609_v12 }
 0x21f   :  { %1576 = vpow2.f32 %v718_v8  ;;  %v638_v51 = vmax.f32 %v636_v42, %v637_v32  ;;  %v653_v4 = vsel %vm37_vm0, %v1972_v9, -inf  ;;  %v1979_v38 = vmul.f32 %v535_v48, %v1864_v37 }
 0x220   :  { %1578 = vpow2.f32 %v726_v3  ;;  %v724_v52 = vmul.f32 1.442695, %v705_v15  ;;  %v732_v55 = vmul.f32 1.442695, %v709_v16  ;;  %v704_v33 = vsub.f32 %v1942_v20, %v610_v25 }
 0x221   :  { %v708_v23 = vsub.f32 %v1945_v21, %v638_v51  ;;  %v654_v6 = vrot.slane %v653_v4, 4  ;;  %v646_v7 = vsel %vm37_vm0, %v1979_v38, -inf  ;;  %v1986_v32 = vmul.f32 %v1478_v13, %v1886_v47  ;;  %v565_v47 = vpop.f32.mrf.mxu1 }
 0x222   :  { %1580 = vpow2.f32 %v724_v52  ;;  %v722_v18 = vmul.f32 1.442695, %v704_v33  ;;  %v647_v19 = vrot.slane %v646_v7, 4  ;;  %v1989_v37 = vmul.f32 %v545_v1, %v1914_v61 }
 0x223   :  { %1582 = vpow2.f32 %v732_v55  ;;  %v730_v48 = vmul.f32 1.442695, %v708_v23  ;;  %v655_v36 = vmax.f32 %v653_v4, %v654_v6  ;;  %v667_v20 = vsel %vm37_vm0, %v1986_v32, -inf }
 0x224   :  { %1584 = vpow2.f32 %v722_v18  ;;  %v648_v21 = vmax.f32 %v646_v7, %v647_v19  ;;  %v668_v26 = vrot.slane %v667_v20, 4  ;;  %v660_v27 = vsel %vm37_vm0, %v1989_v37, -inf }
 0x225   :  { %1586 = vpow2.f32 %v730_v48  ;;  %v656_v13 = vrot.slane %v655_v36, 2  ;;  %v661_v45 = vrot.slane %v660_v27, 4  ;;  %v1996_v46 = vmul.f32 %v1481_v35, %v1859_v34 }
 0x226   :  { %v649_v61 = vrot.slane %v648_v21, 2  ;;  %v669_v1 = vmax.f32 %v667_v20, %v668_v26  ;;  %v1999_v2 = vmul.f32 %v555_v5, %v1869_v39  ;;  %v2002_v57 = vmul.f32 %v1484_v29, %v1891_v28 }
 0x227   :  { %v657_v58 = vmax.f32 %v655_v36, %v656_v13  ;;  %v662_v41 = vmax.f32 %v660_v27, %v661_v45  ;;  %v681_v42 = vsel %vm37_vm0, %v1996_v46, -inf  ;;  %v2007_v60 = vmul.f32 %v565_v47, %v1919_v62 }
 0x228   :  { %v650_v0 = vmax.f32 %v648_v21, %v649_v61  ;;  %v670_v50 = vrot.slane %v669_v1, 2  ;;  %v682_v34 = vrot.slane %v681_v42, 4  ;;  %v674_v35 = vsel %vm37_vm0, %v1999_v2, -inf }
 0x229   :  { %v658_v53 = vrot.slane %v657_v58, 1  ;;  %v663_v39 = vrot.slane %v662_v41, 2  ;;  %v675_v11 = vrot.slane %v674_v35, 4  ;;  %v2013_v28 = vsel %vm37_vm0, %v2002_v57, -inf }
 0x22a   :  { %v2015_v12 = vpop.eup %1572  ;;  %v651_v5 = vrot.slane %v650_v0, 1  ;;  %v671_v8 = vmax.f32 %v669_v1, %v670_v50  ;;  %v2017_v3 = vmax.f32 %v681_v42, %v682_v34 }
 0x22b   :  { %v2020_v15 = vpop.eup %1574  ;;  %v757_v16 = vsel %vm37_vm0, %v2015_v12, 0.0  ;;  %v659_v25 = vmax.f32 %v657_v58, %v658_v53  ;;  %v2024_v51 = vmax.f32 %v662_v41, %v663_v39  ;;  %v2026_v4 = vmax.f32 %v674_v35, %v675_v11 }
 0x22c   :  { %v2028_v52 = vpop.eup %1576  ;;  %v758_v55 = vrot.slane %v757_v16, 4  ;;  %v785_v33 = vsel %vm37_vm0, %v2020_v15, 0.0  ;;  %v652_v29 = vmax.f32 %v650_v0, %v651_v5  ;;  %v672_v23 = vrot.slane %v671_v8, 1 }
 0x22d   :  { %v2032_v6 = vpop.eup %1578  ;;  %v786_v7 = vrot.slane %v785_v33, 4  ;;  %v750_v18 = vsel %vm37_vm0, %v2028_v52, 0.0  ;;  %v711_v19 = vsub.f32 %v1972_v9, %v659_v25  ;;  %v665_v48 = vrot.slane %v2024_v51, 1 }
 0x22e   :  { %v759_v36 = vadd.f32 %v758_v55, %v757_v16  ;;  %v751_v20 = vrot.slane %v750_v18, 4  ;;  %v778_v21 = vsel %vm37_vm0, %v2032_v6, 0.0  ;;  %v710_v26 = vsub.f32 %v1979_v38, %v652_v29 }
 0x22f   :  { %v2041_v27 = vpop.eup %1580  ;;  %v787_v47 = vadd.f32 %v786_v7, %v785_v33  ;;  %v779_v13 = vrot.slane %v778_v21, 4  ;;  %v736_v45 = vmul.f32 1.442695, %v711_v19  ;;  %v673_v61 = vmax.f32 %v671_v8, %v672_v23 }
 0x230   :  { %v2043_v1 = vpop.eup %1582  ;;  %v760_v58 = vrot.slane %v759_v36, 2  ;;  %v752_v41 = vadd.f32 %v751_v20, %v750_v18  ;;  %v771_v9 = vsel %vm37_vm0, %v2041_v27, 0.0  ;;  %v2047_v42 = vmul.f32 1.442695, %v710_v26 }
 0x231   :  { %v2049_v0 = vpop.eup %1584  ;;  %v788_v50 = vrot.slane %v787_v47, 2  ;;  %v780_v34 = vadd.f32 %v779_v13, %v778_v21  ;;  %v772_v38 = vrot.slane %v771_v9, 4  ;;  %v799_v35 = vsel %vm37_vm0, %v2043_v1, 0.0 }
 0x232   :  { %v2053_v53 = vpop.eup %1586  ;;  %v761_v39 = vadd.f32 %v760_v58, %v759_v36  ;;  %v753_v11 = vrot.slane %v752_v41, 2  ;;  %v800_v5 = vrot.slane %v799_v35, 4  ;;  %v764_v8 = vsel %vm37_vm0, %v2049_v0, 0.0 }
 0x233   :  { %v789_v16 = vadd.f32 %v788_v50, %v787_v47  ;;  %v781_v25 = vrot.slane %v780_v34, 2  ;;  %v773_v55 = vadd.f32 %v772_v38, %v771_v9  ;;  %v765_v33 = vrot.slane %v764_v8, 4 }
 0x234   :  { %v762_v29 = vrot.slane %v761_v39, 1  ;;  %v754_v23 = vadd.f32 %v753_v11, %v752_v41  ;;  %v801_v7 = vadd.f32 %v800_v5, %v799_v35  ;;  %v792_v18 = vsel %vm37_vm0, %v2053_v53, 0.0 }
 0x235   :  { %v790_v19 = vrot.slane %v789_v16, 1  ;;  %v782_v20 = vadd.f32 %v781_v25, %v780_v34  ;;  %v774_v21 = vrot.slane %v773_v55, 2  ;;  %v766_v26 = vadd.f32 %v765_v33, %v764_v8 }
 0x236   :  { %v763_v36 = vadd.f32 %v762_v29, %v761_v39  ;;  %v755_v13 = vrot.slane %v754_v23, 1  ;;  %v802_v58 = vrot.slane %v801_v7, 2  ;;  %v793_v62 = vrot.slane %v792_v18, 4 }
 0x237   :  { %v791_v56 = vadd.f32 %v790_v19, %v789_v16  ;;  %v783_v43 = vrot.slane %v782_v20, 1  ;;  %v775_v47 = vadd.f32 %v774_v21, %v773_v55  ;;  %v767_v50 = vrot.slane %v766_v26, 2 }
 0x238   :  { %1588 = vrcp.f32 %v763_v36  ;;  %v756_v9 = vadd.f32 %v755_v13, %v754_v23  ;;  %v803_v38 = vadd.f32 %v802_v58, %v801_v7  ;;  %v794_v41 = vadd.f32 %v793_v62, %v792_v18 }
 0x239   :  { %1590 = vrcp.f32 %v791_v56  ;;  %v784_v35 = vadd.f32 %v783_v43, %v782_v20  ;;  %v776_v11 = vrot.slane %v775_v47, 1  ;;  %v768_v5 = vadd.f32 %v767_v50, %v766_v26 }
 0x23a   :  { %1592 = vrcp.f32 %v756_v9  ;;  %v804_v34 = vrot.slane %v803_v38, 1  ;;  %v795_v25 = vrot.slane %v794_v41, 2  ;;  %v713_v39 = vsub.f32 %v1986_v32, %v673_v61 }
 0x23b   :  { %1594 = vrcp.f32 %v784_v35  ;;  %v777_v8 = vadd.f32 %v776_v11, %v775_v47  ;;  %v769_v33 = vrot.slane %v768_v5, 1  ;;  %v666_v16 = vmax.f32 %v2024_v51, %v665_v48 }
 0x23c   :  { %v805_v55 = vadd.f32 %v804_v34, %v803_v38  ;;  %v796_v29 = vadd.f32 %v795_v25, %v794_v41  ;;  %1596 = vpow2.f32 %v736_v45  ;;  %v740_v23 = vmul.f32 1.442695, %v713_v39 }
 0x23d   :  { %1598 = vrcp.f32 %v777_v8  ;;  %v770_v62 = vadd.f32 %v769_v33, %v768_v5  ;;  %v712_v43 = vsub.f32 %v1989_v37, %v666_v16  ;;  %v684_v56 = vrot.slane %v2017_v3, 2 }
 0x23e   :  { %1600 = vrcp.f32 %v805_v55  ;;  %v797_v7 = vrot.slane %v796_v29, 1  ;;  %v677_v18 = vrot.slane %v2026_v4, 2  ;;  %v2243_v32 = vrot.slane %v2013_v28, 4 }
 0x23f   :  { %1602 = vrcp.f32 %v770_v62  ;;  %v738_v51 = vmul.f32 1.442695, %v712_v43  ;;  %v685_v48 = vmax.f32 %v2017_v3, %v684_v56  ;;  %v688_v45 = vsel %vm37_vm0, %v2007_v60, -inf }
 0x240   :  { %v697_v61 = vmax.f32 %v2013_v28, %v2243_v32  ;;  %v798_v19 = vadd.f32 %v797_v7, %v796_v29  ;;  %1604 = vpow2.f32 %v2047_v42  ;;  %v678_v37 = vmax.f32 %v2026_v4, %v677_v18 }
 0x241   :  { %v2074_v21 = vmul.f32 %v1959_v59, %v1849_v30  ;;  %1606 = vpow2.f32 %v740_v23  ;;  %v686_v26 = vrot.slane %v685_v48, 1  ;;  %v689_v28 = vrot.slane %v688_v45, 4 }
 0x242   :  { %v698_v20 = vrot.slane %v697_v61, 2  ;;  %v2078_v36 = vmul.f32 %v1961_v14, %v1849_v30  ;;  %1608 = vrcp.f32 %v798_v19  ;;  %v679_v3 = vrot.slane %v678_v37, 1 }
 0x243   :  { %v998_v42 = vmul.f32 %v1903_v54, %v1847_v24  ;;  %1610 = vpow2.f32 %v738_v51  ;;  %v687_v4 = vmax.f32 %v685_v48, %v686_v26  ;;  %v690_v58 = vmax.f32 %v688_v45, %v689_v28 }
 0x244   :  { %v699_v13 = vmax.f32 %v697_v61, %v698_v20  ;;  %v999_v59 = vmul.f32 %v1933_v10, %v1847_v24  ;;  %v1000_v47 = vmul.f32 %v1947_v22, %v1847_v24  ;;  %v680_v50 = vmax.f32 %v678_v37, %v679_v3 }
 0x245   :  { %v1589_v38 = vpop.eup %1588  ;;  %v1001_v14 = vmul.f32 %v1955_v40, %v1847_v24  ;;  %v1002_v41 = vmul.f32 %v1921_v63, %v1847_v24  ;;  %v715_v54 = vsub.f32 %v1996_v46, %v687_v4  ;;  %v691_v35 = vrot.slane %v690_v58, 2 }
 0x246   :  { %v700_v9 = vrot.slane %v699_v13, 1  ;;  %v1591_v11 = vpop.eup %1590  ;;  %v1003_v5 = vmul.f32 %v1935_v17, %v1847_v24  ;;  %v865_v10 = vmul.f32 %v1589_v38, %v2015_v12  ;;  %v714_v22 = vsub.f32 %v1999_v2, %v680_v50 }
 0x247   :  { %v1593_v25 = vpop.eup %1592  ;;  %v873_v39 = vmul.f32 %v1591_v11, %v2020_v15  ;;  %v744_v8 = vmul.f32 1.442695, %v715_v54  ;;  %v692_v40 = vmax.f32 %v690_v58, %v691_v35  ;;  %v1004_v63 = vmul.f32 %v1949_v31, %v1847_v24 }
 0x248   :  { %v701_v34 = vmax.f32 %v699_v13, %v700_v9  ;;  %v1595_v33 = vpop.eup %1594  ;;  %v1015_v46 = vmul.f32 %v999_v59, %v865_v10  ;;  %v863_v16 = vmul.f32 %v1593_v25, %v2028_v52  ;;  %v742_v55 = vmul.f32 1.442695, %v714_v22 }
 0x249   :  { %v2100_v29 = vpop.eup %1596  ;;  %v871_v2 = vmul.f32 %v1595_v33, %v2032_v6  ;;  %1612 = vpow2.f32 %v744_v8  ;;  %v693_v12 = vrot.slane %v692_v40, 1  ;;  %v1005_v15 = vmul.f32 %v1957_v49, %v1847_v24 }
 0x24a   :  { %v717_v17 = vsub.f32 %v2002_v57, %v701_v34  ;;  %v1599_v23 = vpop.eup %1598  ;;  %v1037_v62 = vsel %vm37_vm0, %v1015_v46, 0.0  ;;  %v1014_v31 = vmul.f32 %v998_v42, %v863_v16  ;;  %v813_v43 = vsel %vm37_vm0, %v2100_v29, 0.0 }
 0x24b   :  { %1614 = vpow2.f32 %v742_v55  ;;  %v1601_v52 = vpop.eup %1600  ;;  %v1038_v56 = vrot.slane %v1037_v62, 4  ;;  %v869_v57 = vmul.f32 %v1599_v23, %v2041_v27  ;;  %v814_v7 = vrot.slane %v813_v43, 4 }
 0x24c   :  { %v2109_v18 = vmul.f32 %v1003_v5, %v873_v39  ;;  %v1603_v6 = vpop.eup %1602  ;;  %v1030_v32 = vsel %vm37_vm0, %v1014_v31, 0.0  ;;  %v2112_v61 = vmul.f32 %v1002_v41, %v871_v2  ;;  %v748_v24 = vmul.f32 1.442695, %v717_v17 }
 0x24d   :  { %v694_v49 = vmax.f32 %v692_v40, %v693_v12  ;;  %v2114_v51 = vpop.eup %1604  ;;  %v1039_v48 = vadd.f32 %v1038_v56, %v1037_v62  ;;  %v1031_v45 = vrot.slane %v1030_v32, 4  ;;  %v1017_v19 = vmul.f32 %v1001_v14, %v869_v57 }
 0x24e   :  { %v867_v37 = vmul.f32 %v1603_v6, %v2049_v0  ;;  %v2117_v20 = vpop.eup %1606  ;;  %v815_v27 = vadd.f32 %v814_v7, %v813_v43  ;;  %v806_v26 = vsel %vm37_vm0, %v2114_v51, 0.0  ;;  %1616 = vpow2.f32 %v748_v24 }
 0x24f   :  { %v877_v28 = vmul.f32 %v1601_v52, %v2043_v1  ;;  %v1609_v3 = vpop.eup %1608  ;;  %v1040_v13 = vrot.slane %v1039_v48, 2  ;;  %v1032_v42 = vadd.f32 %v1031_v45, %v1030_v32  ;;  %v716_v58 = vsub.f32 %v2007_v60, %v694_v49 }
 0x250   :  { %v1016_v4 = vmul.f32 %v1000_v47, %v867_v37  ;;  %v2123_v59 = vpop.eup %1610  ;;  %v1051_v50 = vsel %vm37_vm0, %v1017_v19, 0.0  ;;  %v875_v0 = vmul.f32 %v1609_v3, %v2053_v53  ;;  %v816_v9 = vrot.slane %v815_v27, 2 }
 0x251   :  { %v807_v38 = vrot.slane %v806_v26, 4  ;;  %v1033_v14 = vrot.slane %v1032_v42, 2  ;;  %v827_v1 = vsel %vm37_vm0, %v2117_v20, 0.0  ;;  %v820_v54 = vsel %vm37_vm0, %v2123_v59, 0.0 }
 0x252   :  { %v1044_v41 = vsel %vm37_vm0, %v1016_v4, 0.0  ;;  %v817_v35 = vadd.f32 %v816_v9, %v815_v27  ;;  %v828_v11 = vrot.slane %v827_v1, 4  ;;  %v1052_v5 = vrot.slane %v1051_v50, 4 }
 0x253   :  { %v1045_v47 = vrot.slane %v1044_v41, 4  ;;  %v808_v60 = vadd.f32 %v807_v38, %v806_v26  ;;  %v821_v10 = vrot.slane %v820_v54, 4  ;;  %v746_v22 = vmul.f32 1.442695, %v716_v58 }
 0x254   :  { %v1020_v34 = vmul.f32 %v1004_v63, %v875_v0  ;;  %v818_v25 = vrot.slane %v817_v35, 1  ;;  %v829_v8 = vadd.f32 %v828_v11, %v827_v1  ;;  %v1034_v33 = vadd.f32 %v1033_v14, %v1032_v42 }
 0x255   :  { %v1046_v53 = vadd.f32 %v1045_v47, %v1044_v41  ;;  %v809_v39 = vrot.slane %v808_v60, 2  ;;  %v822_v40 = vadd.f32 %v821_v10, %v820_v54  ;;  %1618 = vpow2.f32 %v746_v22 }
 0x256   :  { %v1041_v46 = vadd.f32 %v1040_v13, %v1039_v48  ;;  %v2132_v16 = vpop.eup %1612  ;;  %v819_v55 = vadd.f32 %v818_v25, %v817_v35  ;;  %v830_v2 = vrot.slane %v829_v8, 2  ;;  %v2134_v12 = vmul.f32 %v1005_v15, %v877_v28 }
 0x257   :  { %v810_v17 = vadd.f32 %v809_v39, %v808_v60  ;;  %v823_v62 = vrot.slane %v822_v40, 2  ;;  %v841_v63 = vsel %vm37_vm0, %v2132_v16, 0.0  ;;  %v1035_v31 = vrot.slane %v1034_v33, 1 }
 0x258   :  { %v2136_v23 = vpop.eup %1614  ;;  %v1047_v43 = vrot.slane %v1046_v53, 2  ;;  %1620 = vrcp.f32 %v819_v55  ;;  %v831_v56 = vadd.f32 %v830_v2, %v829_v8  ;;  %v842_v57 = vrot.slane %v841_v63, 4 }
 0x259   :  { %v811_v52 = vrot.slane %v810_v17, 1  ;;  %v824_v7 = vadd.f32 %v823_v62, %v822_v40  ;;  %v834_v6 = vsel %vm37_vm0, %v2136_v23, 0.0  ;;  %v2142_v32 = vadd.f32 %v1035_v31, %v1034_v33 }
 0x25a   :  { %v1042_v15 = vrot.slane %v1041_v46, 1  ;;  %v832_v49 = vrot.slane %v831_v56, 1  ;;  %v843_v48 = vadd.f32 %v842_v57, %v841_v63  ;;  %v835_v45 = vrot.slane %v834_v6, 4 }
 0x25b   :  { %v812_v24 = vadd.f32 %v811_v52, %v810_v17  ;;  %v2144_v19 = vpop.eup %1616  ;;  %v825_v37 = vrot.slane %v824_v7, 1  ;;  %v1048_v27 = vadd.f32 %v1047_v43, %v1046_v53  ;;  %v1053_v26 = vadd.f32 %v1052_v5, %v1051_v50 }
 0x25c   :  { %v1058_v28 = vsel %vm37_vm0, %v2112_v61, 0.0  ;;  %v833_v3 = vadd.f32 %v832_v49, %v831_v56  ;;  %v844_v13 = vrot.slane %v843_v48, 2  ;;  %v836_v42 = vadd.f32 %v835_v45, %v834_v6 }
 0x25d   :  { %1622 = vrcp.f32 %v812_v24  ;;  %v826_v4 = vadd.f32 %v825_v37, %v824_v7  ;;  %v855_v58 = vsel %vm37_vm0, %v2144_v19, 0.0  ;;  %v1049_v0 = vrot.slane %v1048_v27, 1 }
 0x25e   :  { %v1054_v9 = vrot.slane %v1053_v26, 2  ;;  %1624 = vrcp.f32 %v833_v3  ;;  %v845_v38 = vadd.f32 %v844_v13, %v843_v48  ;;  %v837_v14 = vrot.slane %v836_v42, 2 }
 0x25f   :  { %v856_v41 = vrot.slane %v855_v58, 4  ;;  %1626 = vrcp.f32 %v826_v4  ;;  %v1043_v50 = vadd.f32 %v1042_v15, %v1041_v46  ;;  %v1059_v54 = vrot.slane %v1058_v28, 4 }
 0x260   :  { %v1055_v1 = vadd.f32 %v1054_v9, %v1053_v26  ;;  %v846_v61 = vrot.slane %v845_v38, 1  ;;  %v838_v47 = vadd.f32 %v837_v14, %v836_v42  ;;  %v1065_v60 = vsel %vm37_vm0, %v2109_v18, 0.0 }
 0x261   :  { %v857_v35 = vadd.f32 %v856_v41, %v855_v58  ;;  %v1050_v11 = vadd.f32 %v1049_v0, %v1048_v27  ;;  %v1060_v5 = vadd.f32 %v1059_v54, %v1058_v28  ;;  %v1066_v10 = vrot.slane %v1065_v60, 4 }
 0x262   :  { %v1072_v22 = vsel %vm37_vm0, %v1020_v34, 0.0  ;;  %v2153_v53 = vpop.eup %1618  ;;  %v847_v25 = vadd.f32 %v846_v61, %v845_v38  ;;  %v839_v39 = vrot.slane %v838_v47, 1  ;;  %v1056_v46 = vrot.slane %v1055_v1, 1 }
 0x263   :  { %v858_v8 = vrot.slane %v857_v35, 2  ;;  %v1073_v40 = vrot.slane %v1072_v22, 4  ;;  %v848_v33 = vsel %vm37_vm0, %v2153_v53, 0.0  ;;  %v1061_v55 = vrot.slane %v1060_v5, 2 }
 0x264   :  { %v1067_v17 = vadd.f32 %v1066_v10, %v1065_v60  ;;  %1628 = vrcp.f32 %v847_v25  ;;  %v840_v18 = vadd.f32 %v839_v39, %v838_v47  ;;  %v849_v62 = vrot.slane %v848_v33, 4 }
 0x265   :  { %v859_v2 = vadd.f32 %v858_v8, %v857_v35  ;;  %v1621_v63 = vpop.eup %1620  ;;  %v1062_v34 = vadd.f32 %v1061_v55, %v1060_v5  ;;  %v1074_v43 = vadd.f32 %v1073_v40, %v1072_v22  ;;  %v1079_v52 = vsel %vm37_vm0, %v2134_v12, 0.0  ;;  %v2245_v5 = vld [vmem:[#allocation7_spill] sm:$0xff]  ;;  %v2246_v40 = vld [vmem:[#allocation6_spill] sm:$0xff] }
 0x266   :  { %v1068_v31 = vrot.slane %v1067_v17, 2  ;;  %v881_v56 = vmul.f32 %v1621_v63, %v2100_v29  ;;  %1630 = vrcp.f32 %v840_v18  ;;  %v850_v7 = vadd.f32 %v849_v62, %v848_v33 }
 0x267   :  { %v860_v57 = vrot.slane %v859_v2, 1  ;;  %v1063_v6 = vrot.slane %v1062_v34, 1  ;;  %v1075_v24 = vrot.slane %v1074_v43, 2  ;;  %v1080_v49 = vrot.slane %v1079_v52, 4 }
 0x268   :  { %v1069_v15 = vadd.f32 %v1068_v31, %v1067_v17  ;;  %v1023_v48 = vmul.f32 %v1881_v44, %v881_v56  ;;  %v851_v37 = vrot.slane %v850_v7, 2  ;;  %v1163_v27 = vsel %vm1162_vm1, %v1043_v50, %v2142_v32  ;;  %v2244_v32 = vld [vmem:[#allocation5_spill] sm:$0xff] }
 0x269   :  { %v861_v45 = vadd.f32 %v860_v57, %v859_v2  ;;  %v1057_v26 = vadd.f32 %v1056_v46, %v1055_v1  ;;  %v1076_v29 = vadd.f32 %v1075_v24, %v1074_v43  ;;  %v1081_v3 = vadd.f32 %v1080_v49, %v1079_v52 }
 0x26a   :  { %v1623_v12 = vpop.eup %1622  ;;  %v1070_v28 = vrot.slane %v1069_v15, 1  ;;  %v1093_v13 = vsel %vm37_vm0, %v1023_v48, 0.0  ;;  %v852_v4 = vadd.f32 %v851_v37, %v850_v7  ;;  %v1064_v0 = vadd.f32 %v1063_v6, %v1062_v34 }
 0x26b   :  { %v879_v42 = vmul.f32 %v1623_v12, %v2114_v51  ;;  %1632 = vrcp.f32 %v861_v45  ;;  %v1625_v58 = vpop.eup %1624  ;;  %v1094_v44 = vrot.slane %v1093_v13, 4  ;;  %v1077_v9 = vrot.slane %v1076_v29, 1 }
 0x26c   :  { %v1082_v38 = vrot.slane %v1081_v3, 2  ;;  %v1627_v14 = vpop.eup %1626  ;;  %v885_v50 = vmul.f32 %v1625_v58, %v2117_v20  ;;  %v853_v1 = vrot.slane %v852_v4, 1  ;;  %v1165_v54 = vsel %vm1164_vm2, %v1050_v11, %v1163_v27 }
 0x26d   :  { %v1022_v41 = vmul.f32 %v2244_v32, %v879_v42  ;;  %v1095_v61 = vadd.f32 %v1094_v44, %v1093_v13  ;;  %v883_v47 = vmul.f32 %v1627_v14, %v2123_v59  ;;  %v1071_v35 = vadd.f32 %v1070_v28, %v1069_v15  ;;  %v2247_v28 = vld [vmem:[#allocation9_spill] sm:$0xff] }
 0x26e   :  { %v1083_v51 = vadd.f32 %v1082_v38, %v1081_v3  ;;  %v1025_v10 = vmul.f32 %v2245_v5, %v885_v50  ;;  %v854_v22 = vadd.f32 %v853_v1, %v852_v4  ;;  %v1167_v25 = vsel %vm1166_vm3, %v1057_v26, %v1165_v54 }
 0x26f   :  { %v1086_v60 = vsel %vm37_vm0, %v1022_v41, 0.0  ;;  %v1096_v39 = vrot.slane %v1095_v61, 2  ;;  %v1024_v33 = vmul.f32 %v2246_v40, %v883_v47  ;;  %v1078_v11 = vadd.f32 %v1077_v9, %v1076_v29 }
 0x270   :  { %v1087_v8 = vrot.slane %v1086_v60, 4  ;;  %v1084_v20 = vrot.slane %v1083_v51, 1  ;;  %v1107_v46 = vsel %vm37_vm0, %v1025_v10, 0.0  ;;  %1634 = vrcp.f32 %v854_v22 }
 0x271   :  { %v1169_v59 = vsel %vm1168_vm4, %v1064_v0, %v1167_v25  ;;  %v1629_v55 = vpop.eup %1628  ;;  %v1097_v17 = vadd.f32 %v1096_v39, %v1095_v61  ;;  %v1108_v2 = vrot.slane %v1107_v46, 4  ;;  %v1100_v62 = vsel %vm37_vm0, %v1024_v33, 0.0 }
 0x272   :  { %v1088_v18 = vadd.f32 %v1087_v8, %v1086_v60  ;;  %v1101_v63 = vrot.slane %v1100_v62, 4  ;;  %v889_v34 = vmul.f32 %v1629_v55, %v2132_v16  ;;  %v1085_v31 = vadd.f32 %v1084_v20, %v1083_v51 }
 0x273   :  { %v1171_v43 = vsel %vm1170_vm5, %v1071_v35, %v1169_v59  ;;  %v1631_v52 = vpop.eup %1630  ;;  %v1098_v56 = vrot.slane %v1097_v17, 1  ;;  %v1109_v7 = vadd.f32 %v1108_v2, %v1107_v46  ;;  %v1013_v29 = vmul.f32 %v2247_v28, %v1849_v30 }
 0x274   :  { %v1089_v57 = vrot.slane %v1088_v18, 2  ;;  %v1173_v6 = vsel %vm1172_vm6, %v1078_v11, %v1171_v43  ;;  %v1102_v15 = vadd.f32 %v1101_v63, %v1100_v62  ;;  %v1027_v24 = vmul.f32 %v2078_v36, %v889_v34 }
 0x275   :  { %v887_v49 = vmul.f32 %v1631_v52, %v2136_v23  ;;  %v1175_v48 = vsel %vm1174_vm7, %v1085_v31, %v1173_v6  ;;  %v1110_v37 = vrot.slane %v1109_v7, 2  ;;  %v1099_v58 = vadd.f32 %v1098_v56, %v1097_v17 }
 0x276   :  { %v1090_v45 = vadd.f32 %v1089_v57, %v1088_v18  ;;  %1493 = vmatprep.mubr.msk.f32.mxu0 %vm37_vm0, %v1175_v48  ;;  %v1103_v16 = vrot.slane %v1102_v15, 2  ;;  %v1121_v27 = vsel %vm37_vm0, %v1027_v24, 0.0 }
 0x277   :  { %v1026_v12 = vmul.f32 %v2074_v21, %v887_v49  ;;  %v1122_v13 = vrot.slane %v1121_v27, 4  ;;  %v1111_v36 = vadd.f32 %v1110_v37, %v1109_v7  ;;  %v2249_v7 = vld [vmem:[#allocation2_spill] sm:$0xff]  ;;  %v2250_v37 = vld [vmem:[#allocation4_spill] sm:$0xff] }
 0x278   :  { %v1633_v26 = vpop.eup %1632  ;;  %v1091_v3 = vrot.slane %v1090_v45, 1  ;;  %v1104_v42 = vadd.f32 %v1103_v16, %v1102_v15  ;;  %v1144_v6 = vsub.s32 3, %v2249_v7  ;;  %v1648_v15 = vld [vmem:[%s2229_s2 + $0x60] sm:$0x3f] }
 0x279   :  { %v1114_v23 = vsel %vm37_vm0, %v1026_v12, 0.0  ;;  %v893_v4 = vmul.f32 %v1633_v26, %v2144_v19  ;;  %v1112_v9 = vrot.slane %v1111_v36, 1  ;;  %v1123_v38 = vadd.f32 %v1122_v13, %v1121_v27  ;;  %v2248_v19 = vld [vmem:[#allocation8_spill] sm:$0xff]  ;;  %v2251_v26 = vld [vmem:[#allocation3_spill] sm:$0xff] }
 0x27a   :  { %v1115_v44 = vrot.slane %v1114_v23, 4  ;;  %v1092_v0 = vadd.f32 %v1091_v3, %v1090_v45  ;;  %v1105_v32 = vrot.slane %v1104_v42, 1  ;;  %v1012_v5 = vmul.f32 %v2248_v19, %v1849_v30 }
 0x27b   :  { %v1029_v14 = vmul.f32 %v1013_v29, %v893_v4  ;;  %v1124_v41 = vrot.slane %v1123_v38, 2  ;;  %v1113_v47 = vadd.f32 %v1112_v9, %v1111_v36  ;;  %v1145_v24 = vrot.slane %v1648_v15, %v1144_v6 }
 0x27c   :  { %v1116_v21 = vadd.f32 %v1115_v44, %v1114_v23  ;;  %v1176_v50 = vsel %vm1162_vm1, %v1099_v58, %v1092_v0  ;;  %v1106_v1 = vadd.f32 %v1105_v32, %v1104_v42  ;;  %v1649_v0 = vld [vmem:[%s2228_s0 + $0x8] sm:$0xff] }
 0x27d   :  { %v1135_v54 = vsel %vm37_vm0, %v1029_v14, 0.0  ;;  %v1635_v61 = vpop.eup %1634  ;;  %v1125_v51 = vadd.f32 %v1124_v41, %v1123_v38  ;;  %v1650_v14 = vld [vmem:[%s2228_s0] sm:$0xff] }
 0x27e   :  { %v1117_v35 = vrot.slane %v1116_v21, 2  ;;  %v1136_v60 = vrot.slane %v1135_v54, 4  ;;  %v891_v10 = vmul.f32 %v1635_v61, %v2153_v53  ;;  %v1177_v22 = vsel %vm1164_vm2, %v1106_v1, %v1176_v50 }
 0x27f   :  { %v1178_v8 = vsel %vm1166_vm3, %v1113_v47, %v1177_v22  ;;  %v1126_v33 = vrot.slane %v1125_v51, 1 }
 0x280   :  { %v1118_v25 = vadd.f32 %v1117_v35, %v1116_v21  ;;  %v1137_v39 = vadd.f32 %v1136_v60, %v1135_v54  ;;  %v1028_v40 = vmul.f32 %v1012_v5, %v891_v10 }
 0x281   :  { %v1127_v17 = vadd.f32 %v1126_v33, %v1125_v51  ;;  %v1331_v33 = vsub.s32 5, %v2249_v7 }
 0x282   :  { %v1119_v20 = vrot.slane %v1118_v25, 1  ;;  %v1128_v46 = vsel %vm37_vm0, %v1028_v40, 0.0  ;;  %v1138_v11 = vrot.slane %v1137_v39, 2  ;;  %v1325_v40 = vsub.s32 4, %v2249_v7 }
 0x283   :  { %v1129_v55 = vrot.slane %v1128_v46, 4 }
 0x284   :  { %v1120_v59 = vadd.f32 %v1119_v20, %v1118_v25  ;;  %v1139_v2 = vadd.f32 %v1138_v11, %v1137_v39  ;;  %v1326_v20 = vrot.slane %v1648_v15, %v1325_v40 }
 0x285   :  { %v1130_v18 = vadd.f32 %v1129_v55, %v1128_v46 }
 0x286   :  { %v1179_v30 = vsel %vm1168_vm4, %v1120_v59, %v1178_v8  ;;  %v1140_v34 = vrot.slane %v1139_v2, 1  ;;  %v1332_v59 = vrot.slane %v1648_v15, %v1331_v33 }
 0x287   :  { %v1180_v53 = vsel %vm1170_vm5, %v1127_v17, %v1179_v30  ;;  %v1131_v62 = vrot.slane %v1130_v18, 2 }
 0x288   :  { %v1141_v52 = vadd.f32 %v1140_v34, %v1139_v2 }
 0x289   :  { %v1132_v63 = vadd.f32 %v1131_v62, %v1130_v18 }
 0x28b   :  { %v1133_v31 = vrot.slane %v1132_v63, 1 }
 0x28d   :  { %v1134_v43 = vadd.f32 %v1133_v31, %v1132_v63 }
 0x28f   :  { %v1181_v56 = vsel %vm1172_vm6, %v1134_v43, %v1180_v53 }
 0x290   :  { %v1182_v57 = vsel %vm1174_vm7, %v1141_v52, %v1181_v56 }
 0x291   :  { %1494 = vmatmul.mubr.msk.f32.vlgmr.msra.gmra.mxu0 %vm37_vm0, %v1182_v57 }
 0x351   :  { %v1495_v49 = vpop.f32.mrf.mxu0 }
 0x352   :  { %v1275_v48 = vadd.f32 %v1495_v49, %v1145_v24 }
 0x353   :  { %v1269_v45 = vpop.f32.mrf.mxu0 }
 0x354   :  { %v1279_v16 = vmul.f32 %v1275_v48, %v2250_v37  ;;  %v1270_v27 = vadd.f32 %v1269_v45, %v1145_v24 }
 0x356   :  { %v1399_v12 = vmul.f32 -1.442695, %v1279_v16  ;;  %v1278_v28 = vmul.f32 %v1270_v27, %v2251_v26 }
 0x358   :  { %1636 = vpow2.f32 %v1399_v12  ;;  %v1398_v29 = vmul.f32 -1.442695, %v1278_v28 }
 0x35a   :  { %1638 = vpow2.f32 %v1398_v29 }
 0x365   :  { %v1637_v3 = vpop.eup %1636 }
 0x366   :  { %v1287_v13 = vadd.f32 1.0, %v1637_v3 }
 0x367   :  { %v1639_v36 = vpop.eup %1638 }
 0x368   :  { %1640 = vrcp.f32 %v1287_v13  ;;  %v1286_v42 = vadd.f32 1.0, %v1639_v36 }
 0x36a   :  { %1642 = vrcp.f32 %v1286_v42 }
 0x375   :  { %v1641_v23 = vpop.eup %1640 }
 0x376   :  { %v1293_v4 = vmul.f32 %v1641_v23, %v1275_v48 }
 0x377   :  { %v1643_v58 = vpop.eup %1642 }
 0x378   :  { %v1292_v44 = vmul.f32 %v1643_v58, %v1270_v27  ;;  %v1295_v9 = vadd.f32 %v1649_v0, %v1293_v4 }
 0x37a   :  { %v1299_v38 = vsel %vm37_vm0, %v1295_v9, 0.0  ;;  %v1294_v32 = vadd.f32 %v1650_v14, %v1292_v44 }
 0x37b   :  { %1300 = vadd.xlane.f32.xlu1 %v1299_v38 }
 0x37c   :  { %v1296_v21 = vsel %vm37_vm0, %v1294_v32, 0.0 }
 0x37d   :  { %1297 = vadd.xlane.f32.xlu0 %v1296_v21 }
 0x404   :  { %v1301_v41 = vpop.xlane.xlu1 %1300 }
 0x405   :  { %v1304_v50 = vmul.f32 0.03125, %v1301_v41 }
 0x406   :  { %v1298_v1 = vpop.xlane.xlu0 %1297 }
 0x407   :  { %v1303_v54 = vmul.f32 0.03125, %v1298_v1  ;;  %v1306_v61 = vsub.f32 %v1295_v9, %v1304_v50 }
 0x409   :  { %v1305_v47 = vsub.f32 %v1294_v32, %v1303_v54  ;;  %v1308_v60 = vmul.f32 %v1306_v61, %v1306_v61 }
 0x40b   :  { %v1307_v35 = vmul.f32 %v1305_v47, %v1305_v47  ;;  %v1312_v19 = vsel %vm37_vm0, %v1308_v60, 0.0 }
 0x40d   :  { %v1309_v51 = vsel %vm37_vm0, %v1307_v35, 0.0 }
 0x40e   :  { %1310 = vadd.xlane.f32.xlu0 %v1309_v51 }
 0x412   :  { %1313 = vadd.xlane.f32.xlu0 %v1312_v19 }
 0x497   :  { %v1311_v5 = vpop.xlane.xlu0 %1310 }
 0x498   :  { %v1315_v10 = vmul.f32 0.03125, %v1311_v5 }
 0x49a   :  { %v1317_v22 = vadd.f32 1e-05, %v1315_v10 }
 0x49b   :  { %v1314_v25 = vpop.xlane.xlu0 %1313 }
 0x49c   :  { %1644 = vrsqrt.f32 %v1317_v22  ;;  %v1316_v39 = vmul.f32 0.03125, %v1314_v25 }
 0x49e   :  { %v1318_v8 = vadd.f32 1e-05, %v1316_v39 }
 0x4a0   :  { %1646 = vrsqrt.f32 %v1318_v8 }
 0x4a9   :  { %v1645_v46 = vpop.eup %1644 }
 0x4aa   :  { %v1321_v11 = vmul.f32 %v1645_v46, %v1305_v47 }
 0x4ac   :  { %v1327_v55 = vmul.f32 %v1326_v20, %v1321_v11 }
 0x4ad   :  { %v1647_v17 = vpop.eup %1646 }
 0x4ae   :  { %v1333_v18 = vadd.f32 %v1332_v59, %v1327_v55  ;;  %v1322_v30 = vmul.f32 %v1647_v17, %v1306_v61 }
 0x4b0   :  { %v1336_v2 = vrot.slane %v1333_v18, 4  ;;  %v1328_v53 = vmul.f32 %v1326_v20, %v1322_v30 }
 0x4b2   :  { %1337 = vrot.lane.b32.xlu1 %v1336_v2, %s1651_s28  ;;  %v1334_v62 = vadd.f32 %v1332_v59, %v1328_v53 }
 0x4b4   :  { %1341 = vrot.lane.b32.xlu0 %v1334_v62, %s1653_s16  ;;  %v1344_v63 = vrot.slane %v1334_v62, 4 }
 0x4b6   :  { %1345 = vrot.lane.b32.xlu1 %v1344_v63, %s1652_s15 }
 0x524   :  { %v1338_v34 = vpop.permute.xlu1 %1337 }
 0x525   :  { %v1348_v31 = vsel %vm37_vm0, %v1333_v18, %v1338_v34 }
 0x526   :  { %v1342_v43 = vpop.permute.xlu0 %1341 }
 0x527   :  { %v1350_v52 = vsel %vm1349_vm8, %v1348_v31, %v1342_v43 }
 0x528   :  { %v1346_v56 = vpop.permute.xlu1 %1345 }
 0x529   :  { %v1352_v57 = vsel %vm1351_vm9, %v1350_v52, %v1346_v56 }
 0x52a   :  { %1353 = vst [vmem:[%s2230_s3] sm:$0xf] %v1352_v57 }

</bundles_post_ra>
